<compile_context>
chip_gen: v6e
topology: v6e:2x2x1
jax: 0.10.0
libtpu: 0.0.40
codegen_flags: <defaults>
</compile_context>

<pallas_src>
import jax
import jax.numpy as jnp
from jax.experimental import pallas as pl
from jax.experimental.pallas import tpu as pltpu


def _round_up(x, m):
    return ((x + m - 1) // m) * m


def _rope_kernel(pos_ref, inv_freq_ref, cos_ref, sin_ref):
    # pos_ref:      (TILE_R, 1)   float32
    # inv_freq_ref: (1, dim)      float32  (already duplicated: [f, f])
    # cos_ref/sin_ref: (TILE_R, dim) in output dtype
    emb = pos_ref[...] * inv_freq_ref[...]          # broadcast -> (TILE_R, dim)
    cos_ref[...] = jnp.cos(emb).astype(cos_ref.dtype)
    sin_ref[...] = jnp.sin(emb).astype(sin_ref.dtype)


def gemma2_rotary_embedding(x, position_ids, dim, base=10000.0, tile_rows=1024):
    """Pallas implementation of Gemma2RotaryEmbedding.forward.

    Args:
      x: array whose dtype determines the output dtype (content unused).
      position_ids: (B, S) integer positions.
      dim: rotary dimension (head_dim); must be even.
      base: rotary base.
      tile_rows: rows of (B*S) processed per grid step (rounded to 8).

    Returns:
      (cos, sin), each of shape (B, S, dim) and dtype x.dtype.
    """
    half = dim // 2
    inv_freq = 1.0 / (base ** (jnp.arange(0, dim, 2, dtype=jnp.float32) / dim))
    # Duplicate to full width so emb = cat(freqs, freqs) is a single
    # lane-dense broadcast-multiply in the kernel (no in-kernel concat).
    inv_freq_full = jnp.concatenate([inv_freq, inv_freq]).reshape(1, dim)

    B, S = position_ids.shape
    rows = B * S

    # Tile sizing: multiple of 8 sublanes; double-buffered cos+sin tiles plus
    # the f32 intermediate stay far inside VMEM on all chips.
    tile_r = min(_round_up(tile_rows, 8), _round_up(rows, 8))
    rows_padded = _round_up(rows, tile_r)

    # float32 positions are exact up to 2^24 — fine for rotary position ids.
    pos_flat = position_ids.reshape(rows, 1).astype(jnp.float32)
    if rows_padded != rows:
        # Padded rows compute cos(0)/sin(0); sliced away below.
        pos_flat = jnp.pad(pos_flat, ((0, rows_padded - rows), (0, 0)))

    grid = (rows_padded // tile_r,)
    out_shape = (
        jax.ShapeDtypeStruct((rows_padded, dim), x.dtype),
        jax.ShapeDtypeStruct((rows_padded, dim), x.dtype),
    )

    cos, sin = pl.pallas_call(
        _rope_kernel,
        out_shape=out_shape,
        grid_spec=pltpu.PrefetchScalarGridSpec(
            num_scalar_prefetch=0,
            grid=grid,
            in_specs=[
                pl.BlockSpec((tile_r, 1), lambda i: (i, 0)),    # positions
                pl.BlockSpec((1, dim), lambda i: (0, 0)),       # inv_freq (tiny)
            ],
            out_specs=[
                pl.BlockSpec((tile_r, dim), lambda i: (i, 0)),  # cos
                pl.BlockSpec((tile_r, dim), lambda i: (i, 0)),  # sin
            ],
        ),
        compiler_params=pltpu.CompilerParams(
            dimension_semantics=("parallel",),
            vmem_limit_bytes=64 << 20,
        ),
    )(pos_flat, inv_freq_full)

    cos = cos[:rows].reshape(B, S, dim)
    sin = sin[:rows].reshape(B, S, dim)
    return cos, sin


def _reference(x, position_ids, dim, base=10000.0):
    """Pure-JAX reference mirroring the PyTorch forward."""
    inv_freq = 1.0 / (base ** (jnp.arange(0, dim, 2, dtype=jnp.float32) / dim))
    pos = position_ids.astype(jnp.float32)                     # (B, S)
    freqs = jnp.einsum("k,bs->bsk", inv_freq, pos)             # (B, S, half)
    emb = jnp.concatenate([freqs, freqs], axis=-1)             # (B, S, dim)
    return jnp.cos(emb).astype(x.dtype), jnp.sin(emb).astype(x.dtype)


if __name__ == "__main__":
    key = jax.random.PRNGKey(0)
    # Small but representative shapes: real Gemma2 head_dim (128) keeps the
    # output lane-dense (multiple of 128).
    B, S, DIM = 2, 8, 128
    kx, kp = jax.random.split(key)

    # x is only used for its dtype in the PyTorch forward.
    x = jax.random.normal(kx, (B, S, DIM), dtype=jnp.float32).astype(jnp.bfloat16)
    position_ids = jax.random.randint(kp, (B, S), 0, 2048, dtype=jnp.int32)

    cos, sin = gemma2_rotary_embedding(x, position_ids, DIM)
    cos, sin = jax.block_until_ready((cos, sin))

    cos_ref, sin_ref = _reference(x, position_ids, DIM)
    assert cos.shape == (B, S, DIM) and sin.shape == (B, S, DIM)
    assert cos.dtype == x.dtype and sin.dtype == x.dtype
    assert jnp.allclose(cos.astype(jnp.float32), cos_ref.astype(jnp.float32),
                        atol=1e-2, rtol=1e-2)
    assert jnp.allclose(sin.astype(jnp.float32), sin_ref.astype(jnp.float32),
                        atol=1e-2, rtol=1e-2)

    print("KERNEL_OK")
</pallas_src>

<mosaic_0001>
module attributes {stable_mosaic.version = 11 : i64} {
  func.func @_rope_kernel(%arg0: i32, %arg1: memref<16x1xf32, #tpu.memory_space<vmem>>, %arg2: memref<1x128xf32, #tpu.memory_space<vmem>>, %arg3: memref<16x128xbf16, #tpu.memory_space<vmem>>, %arg4: memref<16x128xbf16, #tpu.memory_space<vmem>>) attributes {dimension_semantics = [#tpu.dimension_semantics<parallel>], iteration_bounds = array<i64: 1>, scalar_prefetch = 0 : i64, scratch_operands = 0 : i64, tpu.core_type = #tpu.core_type<tc>, window_params = [{transform_indices = @transform_0, window_bounds = array<i64: 16, 1>}, {pipeline_mode = #tpu.pipeline_mode<synchronous>, transform_indices = @transform_1, window_bounds = array<i64: 1, 128>}, {transform_indices = @transform_2, window_bounds = array<i64: 16, 128>}, {transform_indices = @transform_3, window_bounds = array<i64: 16, 128>}]} {
    %c0 = arith.constant 0 : index
    %c0_0 = arith.constant 0 : index
    %0 = vector.load %arg1[%c0, %c0_0] : memref<16x1xf32, #tpu.memory_space<vmem>>, vector<16x1xf32>
    %c0_1 = arith.constant 0 : index
    %c0_2 = arith.constant 0 : index
    %1 = vector.load %arg2[%c0_1, %c0_2] : memref<1x128xf32, #tpu.memory_space<vmem>>, vector<1x128xf32>
    %2 = vector.broadcast %0 : vector<16x1xf32> to vector<16x128xf32>
    %3 = vector.broadcast %1 : vector<1x128xf32> to vector<16x128xf32>
    %4 = arith.mulf %2, %3 : vector<16x128xf32>
    %5 = math.cos %4 : vector<16x128xf32>
    %6 = arith.truncf %5 : vector<16x128xf32> to vector<16x128xbf16>
    %c0_3 = arith.constant 0 : index
    %c0_4 = arith.constant 0 : index
    %7 = vector.load %arg3[%c0_3, %c0_4] : memref<16x128xbf16, #tpu.memory_space<vmem>>, vector<16x128xbf16>
    tpu.vector_store %arg3[%c0_3, %c0_4], %6 {strides = array<i32>} : memref<16x128xbf16, #tpu.memory_space<vmem>>, vector<16x128xbf16>,
    %8 = math.sin %4 : vector<16x128xf32>
    %9 = arith.truncf %8 : vector<16x128xf32> to vector<16x128xbf16>
    %c0_5 = arith.constant 0 : index
    %c0_6 = arith.constant 0 : index
    %10 = vector.load %arg4[%c0_5, %c0_6] : memref<16x128xbf16, #tpu.memory_space<vmem>>, vector<16x128xbf16>
    tpu.vector_store %arg4[%c0_5, %c0_6], %9 {strides = array<i32>} : memref<16x128xbf16, #tpu.memory_space<vmem>>, vector<16x128xbf16>,
    return
  }
  func.func @transform_0(%arg0: i32) -> (i32, i32) {
    %c0_i32 = arith.constant 0 : i32
    %c0_i32_0 = arith.constant 0 : i32
    return %arg0, %c0_i32 : i32, i32
  }
  func.func @transform_1(%arg0: i32) -> (i32, i32) {
    %c0_i32 = arith.constant 0 : i32
    %c0_i32_0 = arith.constant 0 : i32
    %c0_i32_1 = arith.constant 0 : i32
    return %c0_i32, %c0_i32_0 : i32, i32
  }
  func.func @transform_2(%arg0: i32) -> (i32, i32) {
    %c0_i32 = arith.constant 0 : i32
    %c0_i32_0 = arith.constant 0 : i32
    return %arg0, %c0_i32 : i32, i32
  }
  func.func @transform_3(%arg0: i32) -> (i32, i32) {
    %c0_i32 = arith.constant 0 : i32
    %c0_i32_0 = arith.constant 0 : i32
    return %arg0, %c0_i32 : i32, i32
  }
}

</mosaic_0001>

<bundles_post_ra>
// kernel: tpu_custom_call.1
= control target key start
LH: loop header
LB: loop body
LE: loop exit
PB: predicated region body
PF: predicated region fallthrough
CT: control target
= control target key end

     0   :  { %9 = vsyncpa [#allocation3], 0  ;;  %v609_v1 = vmov 0   ;;  %s732_s0 = inlined_call_operand.vmem [shape: f32[16,1], index: 0, kind: input, shape index: {}]   ;;  %s733_s1 = inlined_call_operand.vmem [shape: f32[1,128], index: 1, kind: input, shape index: {}]   ;;  %s734_s2 = inlined_call_operand.hbm [shape: bf16[16,128], index: 2, kind: output, shape index: {0}]   ;;  %s735_s3 = inlined_call_operand.hbm [shape: bf16[16,128], index: 3, kind: output, shape index: {1}]  }
   0x1   :  { %v15_v0 = vld [vmem:[%s732_s0] sm:$0xff]  ;;  %556 = vset.pattern.permute.xlu0 %v609_v1  ;;  %v16_v2 = vld [vmem:[%s732_s0 + $0x8] sm:$0xff] }
   0x2   :  { %20 = vperm.xlu0 %556, %v15_v0  }
   0x3   :  { %10 = vsyncpa [#allocation5], 0  ;;  %v502_v3 = vld [vmem:[%s733_s1] ss:$0 sm:$0xff]  ;;  %v610_v24 = vmov 683565275  }
   0x4   :  { %v611_v28 = vmov 2475754826   ;;  %v612_v30 = vmov 2131351028   ;;  %v613_v32 = vmov 2102212464  }
   0x5   :  { %v614_v34 = vmov 920167782   ;;  %v615_v41 = vmov 1326507024   ;;  %s616_s0 = smov [#allocation2]   ;;  %s617_s18 = smov [#allocation4]  }
   0x6   :  { %25 = vperm.xlu0 %556, %v16_v2   ;;  %s475_s1 = sshll.u32 %s616_s0, 4  ;;  %s487_s19 = sshll.u32 %s617_s18, 4  ;;  %s476_s1 = int_to_ptr.vmem [resolvable:$true] %s475_s1  ;;  %s488_s19 = int_to_ptr.vmem [resolvable:$true] %s487_s19 }
   0x7   :  { %s565_s20 = scalar_lea.vmem %s476_s1, 128  ;;  %p570_p1 = scmp.lt.s32.totalorder %s476_s1, %s476_s1 }
   0x8   :  { %p566_p0 = scmp.ne.s32.totalorder %s476_s1, %s565_s20  ;;  %p571_p2 = scmp.lt.s32.totalorder %s565_s20, %s565_s20 }
   0xa   :  { %p572_p3 = por %p571_p2, %p570_p1 }
   0xc   :  { %p573_p4 = pnand %p572_p3, %p566_p0 }
  0x7d   :  { %v21_v4 = vpop.permute.xlu0 %20 }
  0x7e   :  { %v649_v5 = vmul.f32 %v502_v3, %v21_v4 }
  0x80   :  { %v36_v6 = vand.u32 2147483647, %v649_v5  ;;  %v39_v7 = vand.u32 2139095040, %v649_v5  ;;  %vm38_vm14 = vcmp.lt.s32.totalorder %v649_v5, 0 }
  0x81   :  { %v26_v8 = vpop.permute.xlu0 %25 }
  0x82   :  { %v40_v9 = vshrl.u32 %v39_v7, 23  ;;  %v653_v10 = vmul.f32 %v502_v3, %v26_v8  ;;  %v43_v11 = vand.u32 8388607, %v36_v6  ;;  %vm707_vm15 = vcmp.le.f32.partialorder %v36_v6, 0.7853982 }
  0x84   :  { %v503_v12 = vadd.s32 4294967169, %v40_v9  ;;  %v142_v13 = vand.u32 2139095040, %v653_v10  ;;  %v44_v15 = vor.u32 8388608, %v43_v11  ;;  %v139_v17 = vand.u32 2147483647, %v653_v10 }
  0x86   :  { %v46_v14 = vadd.s32 1, %v503_v12  ;;  %v143_v16 = vshrl.u32 %v142_v13, 23  ;;  %v659_v22 = vshll.u32 %v44_v15, 8  ;;  %v146_v26 = vand.u32 8388607, %v139_v17 }
  0x88   :  { %vm47_vm0 = vcmp.gt.s32.totalorder %v46_v14, 0  ;;  %v507_v19 = vadd.s32 4294967169, %v143_v16  ;;  %v147_v56 = vor.u32 8388608, %v146_v26 }
  0x89   :  { %v48_v18 = vsel %vm47_vm0, %v46_v14, 0  ;;  %vm141_vm0 = vcmp.lt.s32.totalorder %v653_v10, 0 }
  0x8a   :  { %v49_v20 = vshrl.u32 %v48_v18, 5  ;;  %v50_v21 = vand.u32 31, %v48_v18  ;;  %v149_v27 = vadd.s32 1, %v507_v19  ;;  %v187_v7 = vshll.u32 %v147_v56, 8 }
  0x8c   :  { %v51_v23 = vsub.s32 32, %v50_v21  ;;  %v53_v25 = vshll.u32 %v610_v24, %v50_v21  ;;  %v56_v29 = vshll.u32 %v611_v28, %v50_v21  ;;  %v59_v31 = vshll.u32 %v612_v30, %v50_v21 }
  0x8d   :  { %v62_v33 = vshll.u32 %v613_v32, %v50_v21  ;;  %v65_v35 = vshll.u32 %v614_v34, %v50_v21  ;;  %vm68_vm1 = vcmp.lt.s32.totalorder %v49_v20, 1  ;;  %vm70_vm2 = vcmp.lt.s32.totalorder %v49_v20, 3 }
  0x8e   :  { %v54_v36 = vshrl.u32 %v611_v28, %v51_v23  ;;  %v57_v37 = vshrl.u32 %v612_v30, %v51_v23  ;;  %v60_v38 = vshrl.u32 %v613_v32, %v51_v23  ;;  %v52_v39 = vshrl.u32 %v610_v24, %v51_v23 }
  0x8f   :  { %v63_v40 = vshrl.u32 %v614_v34, %v51_v23  ;;  %v66_v42 = vshrl.u32 %v615_v41, %v51_v23  ;;  %vm150_vm3 = vcmp.gt.s32.totalorder %v149_v27, 0  ;;  %vm71_vm4 = vcmp.lt.s32.totalorder %v49_v20, 4 }
  0x90   :  { %v55_v43 = vor.u32 %v54_v36, %v53_v25  ;;  %v58_v44 = vor.u32 %v57_v37, %v56_v29  ;;  %v61_v45 = vor.u32 %v60_v38, %v59_v31  ;;  %v151_v48 = vsel %vm150_vm3, %v149_v27, 0 }
  0x91   :  { %v64_v46 = vor.u32 %v63_v40, %v62_v33  ;;  %v67_v47 = vor.u32 %v66_v42, %v65_v35  ;;  %vm69_vm5 = vcmp.lt.s32.totalorder %v49_v20, 2  ;;  %v153_v59 = vand.u32 31, %v151_v48 }
  0x92   :  { %v72_v49 = vsel %vm68_vm1, %v52_v39, %v55_v43  ;;  %v73_v50 = vsel %vm71_vm4, %v61_v45, 2102212464  ;;  %v76_v51 = vsel %vm68_vm1, %v55_v43, %v58_v44  ;;  %v80_v52 = vsel %vm68_vm1, %v58_v44, %v61_v45 }
  0x93   :  { %v74_v53 = vsel %vm70_vm2, %v58_v44, %v73_v50  ;;  %v77_v54 = vsel %vm71_vm4, %v64_v46, 920167782  ;;  %v81_v55 = vsel %vm71_vm4, %v67_v47, 1326507024  ;;  %v152_v3 = vshrl.u32 %v151_v48, 5 }
  0x94   :  { %v78_v57 = vsel %vm70_vm2, %v61_v45, %v77_v54  ;;  %v82_v58 = vsel %vm70_vm2, %v64_v46, %v81_v55  ;;  %v75_v60 = vsel %vm69_vm5, %v72_v49, %v74_v53  ;;  %v154_v4 = vsub.s32 32, %v153_v59 }
  0x95   :  { %v79_v61 = vsel %vm69_vm5, %v76_v51, %v78_v57  ;;  %v83_v62 = vsel %vm69_vm5, %v80_v52, %v82_v58  ;;  %v91_v8 = vmul.u32 %v659_v22, %v75_v60  ;;  %v156_v9 = vshll.u32 %v610_v24, %v153_v59 }
  0x96   :  { %v672_v63 = vmul.u32.u64.low %v659_v22, %v83_v62  ;;  %v673_v0 = vmul.u32.u64.high %v659_v22, %v83_v62, %v672_v63  ;;  %v676_v1 = vmul.u32.u64.low %v659_v22, %v79_v61  ;;  %v677_v2 = vmul.u32.u64.high %v659_v22, %v79_v61, %v676_v1 }
  0x97   :  { %v159_v11 = vshll.u32 %v611_v28, %v153_v59  ;;  %v162_v12 = vshll.u32 %v612_v30, %v153_v59  ;;  %v157_v13 = vshrl.u32 %v611_v28, %v154_v4  ;;  %v160_v14 = vshrl.u32 %v612_v30, %v154_v4 }
  0x98   :  { %v163_v15 = vshrl.u32 %v613_v32, %v154_v4  ;;  %v165_v16 = vshll.u32 %v613_v32, %v153_v59  ;;  %vm93_vm6 = vc.u32 %v673_v0, %v676_v1  ;;  %v94_v18 = vadd.s32 1, %v677_v2 }
  0x99   :  { %v166_v19 = vshrl.u32 %v614_v34, %v154_v4  ;;  %v168_v20 = vshll.u32 %v614_v34, %v153_v59  ;;  %v158_v21 = vor.u32 %v157_v13, %v156_v9  ;;  %v161_v23 = vor.u32 %v160_v14, %v159_v11 }
  0x9a   :  { %v164_v25 = vor.u32 %v163_v15, %v162_v12  ;;  %v169_v26 = vshrl.u32 %v615_v41, %v154_v4  ;;  %v95_v22 = vsel %vm93_vm6, %v94_v18, %v677_v2  ;;  %vm171_vm7 = vcmp.lt.s32.totalorder %v152_v3, 1 }
  0x9b   :  { %v167_v27 = vor.u32 %v166_v19, %v165_v16  ;;  %vm174_vm8 = vcmp.lt.s32.totalorder %v152_v3, 4  ;;  %v96_v28 = vadd.s32 %v95_v22, %v91_v8  ;;  %vm173_vm9 = vcmp.lt.s32.totalorder %v152_v3, 3 }
  0x9c   :  { %v170_v29 = vor.u32 %v169_v26, %v168_v20  ;;  %v176_v30 = vsel %vm174_vm8, %v164_v25, 2102212464  ;;  %v155_v31 = vshrl.u32 %v610_v24, %v154_v4  ;;  %v179_v32 = vsel %vm171_vm7, %v158_v21, %v161_v23 }
  0x9d   :  { %v180_v33 = vsel %vm174_vm8, %v167_v27, 920167782  ;;  %v183_v35 = vsel %vm171_vm7, %v161_v23, %v164_v25  ;;  %v97_v36 = vadd.s32 536870912, %v96_v28  ;;  %vm172_vm10 = vcmp.lt.s32.totalorder %v152_v3, 2 }
  0x9e   :  { %v181_v34 = vsel %vm173_vm9, %v164_v25, %v180_v33  ;;  %v184_v37 = vsel %vm174_vm8, %v170_v29, 1326507024  ;;  %v175_v38 = vsel %vm171_vm7, %v155_v31, %v158_v21  ;;  %v177_v39 = vsel %vm173_vm9, %v161_v23, %v176_v30 }
  0x9f   :  { %v182_v40 = vsel %vm172_vm10, %v179_v32, %v181_v34  ;;  %v185_v41 = vsel %vm173_vm9, %v167_v27, %v184_v37  ;;  %v687_v42 = vshrl.u32 %v97_v36, 30  ;;  %v178_v48 = vsel %vm172_vm10, %v175_v38, %v177_v39 }
  0xa0   :  { %v186_v43 = vsel %vm172_vm10, %v183_v35, %v185_v41  ;;  %v689_v44 = vmul.u32.u64.low %v187_v7, %v182_v40  ;;  %v690_v45 = vmul.u32.u64.high %v187_v7, %v182_v40, %v689_v44  ;;  %v194_v51 = vmul.u32 %v187_v7, %v178_v48 }
  0xa1   :  { %v692_v46 = vmul.u32.u64.low %v187_v7, %v186_v43  ;;  %v693_v47 = vmul.u32.u64.high %v187_v7, %v186_v43, %v692_v46  ;;  %v99_v24 = vshll.u32 %v687_v42, 30  ;;  %v92_v63 = vadd.s32 %v676_v1, %v673_v0 }
  0xa2   :  { %v197_v50 = vadd.s32 1, %v690_v45  ;;  %v122_v37 = vsub.s32 4, %v687_v42  ;;  %vm140_vm1 = vcmp.le.f32.partialorder %v139_v17, 0.7853982 }
  0xa3   :  { %v100_v49 = vsub.s32 %v96_v28, %v99_v24  ;;  %vm196_vm11 = vc.u32 %v693_v47, %v689_v44  ;;  %v195_v23 = vadd.s32 %v689_v44, %v693_v47 }
  0xa4   :  { %v198_v53 = vsel %vm196_vm11, %v197_v50, %v690_v45  ;;  %v123_v40 = vsel %vm38_vm14, %v122_v37, %v687_v42 }
  0xa5   :  { %v102_v52 = vsub.s32 0, %v100_v49  ;;  %v199_v54 = vadd.s32 %v198_v53, %v194_v51  ;;  %v125_v43 = vsel %vm707_vm15, 0, %v123_v40 }
  0xa6   :  { %v345_v46 = vadd.s32 3, %v125_v43 }
  0xa7   :  { %v504_v55 = vmin.u32 %v102_v52, %v100_v49  ;;  %v200_v56 = vadd.s32 536870912, %v199_v54 }
  0xa8   :  { %v346_v17 = vand.u32 3, %v345_v46 }
  0xa9   :  { %v104_v57 = vclz %v504_v55  ;;  %v201_v58 = vshrl.u32 %v200_v56, 30 }
  0xaa   :  { %vm348_vm4 = vcmp.eq.s32.totalorder %v346_v17, 0  ;;  %vm351_vm5 = vcmp.eq.s32.totalorder %v346_v17, 2  ;;  %vm347_vm8 = vcmp.lt.s32.totalorder %v346_v17, 2 }
  0xab   :  { %v505_v59 = vadd.s32 4294967294, %v104_v57  ;;  %v202_v60 = vshll.u32 %v201_v58, 30  ;;  %v225_v6 = vsub.s32 4, %v201_v58 }
  0xad   :  { %vm506_vm12 = vcmp.lt.s32.totalorder %v505_v59, 0  ;;  %v203_v62 = vsub.s32 %v199_v54, %v202_v60  ;;  %v226_v44 = vsel %vm141_vm0, %v225_v6, %v201_v58 }
  0xae   :  { %v107_v61 = vsel %vm506_vm12, 0, %v505_v59  ;;  %v228_v45 = vsel %vm140_vm1, 0, %v226_v44 }
  0xaf   :  { %v108_v2 = vsub.s32 32, %v107_v61  ;;  %v112_v3 = vsub.s32 4294967266, %v107_v61  ;;  %v205_v4 = vsub.s32 0, %v203_v62  ;;  %v109_v7 = vshll.u32 %v100_v49, %v107_v61 }
  0xb0   :  { %v449_v48 = vadd.s32 3, %v228_v45  ;;  %v129_v49 = vand.u32 3, %v125_v43  ;;  %v232_v52 = vand.u32 3, %v228_v45 }
  0xb1   :  { %v110_v8 = vshrl.u32 %v92_v63, %v108_v2  ;;  %v113_v9 = vadd.s32 127, %v112_v3  ;;  %v508_v11 = vmin.u32 %v205_v4, %v203_v62 }
  0xb2   :  { %v450_v53 = vand.u32 3, %v449_v48  ;;  %vm131_vm2 = vcmp.eq.s32.totalorder %v129_v49, 0  ;;  %vm134_vm3 = vcmp.eq.s32.totalorder %v129_v49, 2  ;;  %vm130_vm6 = vcmp.lt.s32.totalorder %v129_v49, 2 }
  0xb3   :  { %v111_v12 = vor.u32 %v110_v8, %v109_v7  ;;  %v114_v13 = vshll.u32 %v113_v9, 23  ;;  %v207_v14 = vclz %v508_v11  ;;  %vm234_vm7 = vcmp.eq.s32.totalorder %v232_v52, 0 }
  0xb4   :  { %vm237_vm9 = vcmp.eq.s32.totalorder %v232_v52, 2  ;;  %vm452_vm10 = vcmp.eq.s32.totalorder %v450_v53, 0  ;;  %vm455_vm11 = vcmp.eq.s32.totalorder %v450_v53, 2  ;;  %vm233_vm12 = vcmp.lt.s32.totalorder %v232_v52, 2 }
  0xb5   :  { %v115_v15 = vor.u32 4788187, %v114_v13  ;;  %v509_v16 = vadd.s32 4294967294, %v207_v14  ;;  %v118_v19 = vcvt.s32.f32 %v111_v12 }
  0xb7   :  { %v116_v18 = vand.u32 2147483647, %v115_v15  ;;  %vm510_vm13 = vcmp.lt.s32.totalorder %v509_v16, 0 }
  0xb8   :  { %v210_v21 = vsel %vm510_vm13, 0, %v509_v16  ;;  %vm451_vm13 = vcmp.lt.s32.totalorder %v450_v53, 2 }
  0xb9   :  { %v119_v20 = vmul.f32 %v118_v19, %v116_v18  ;;  %v211_v0 = vsub.s32 32, %v210_v21  ;;  %v215_v1 = vsub.s32 4294967266, %v210_v21  ;;  %v212_v26 = vshll.u32 %v203_v62, %v210_v21 }
  0xbb   :  { %v120_v25 = vxor.u32 2147483648, %v119_v20  ;;  %v213_v22 = vshrl.u32 %v195_v23, %v211_v0  ;;  %v216_v27 = vadd.s32 127, %v215_v1 }
  0xbd   :  { %v121_v28 = vsel %vm38_vm14, %v120_v25, %v119_v20  ;;  %v214_v30 = vor.u32 %v213_v22, %v212_v26  ;;  %v217_v31 = vshll.u32 %v216_v27, 23  ;;  %vm128_vm14 = vweird.f32 %v649_v5 }
  0xbe   :  { %v124_v32 = vsel %vm707_vm15, %v649_v5, %v121_v28  ;;  %vm231_vm15 = vweird.f32 %v653_v10 }
  0xbf   :  { %v218_v33 = vor.u32 4788187, %v217_v31  ;;  %557 = vcosq.f32 %v124_v32  ;;  %v221_v36 = vcvt.s32.f32 %v214_v30 }
  0xc0   :  { %559 = vsinq.f32 %v124_v32 }
  0xc1   :  { %v219_v35 = vand.u32 2147483647, %v218_v33 }
  0xc3   :  { %v222_v34 = vmul.f32 %v221_v36, %v219_v35 }
  0xc5   :  { %v223_v38 = vxor.u32 2147483648, %v222_v34 }
  0xc7   :  { %v224_v39 = vsel %vm141_vm0, %v223_v38, %v222_v34 }
  0xc8   :  { %v227_v41 = vsel %vm140_vm1, %v653_v10, %v224_v39 }
  0xc9   :  { %561 = vcosq.f32 %v227_v41 }
  0xca   :  { %563 = vsinq.f32 %v227_v41 }
  0xcc   :  { %v558_v47 = vpop.eup %557 }
  0xcd   :  { %v560_v24 = vpop.eup %559  ;;  %v135_v51 = vxor.u32 2147483648, %v558_v47 }
  0xce   :  { %v132_v50 = vxor.u32 2147483648, %v560_v24 }
  0xcf   :  { %v136_v55 = vsel %vm134_vm3, %v135_v51, %v560_v24  ;;  %v353_v57 = vsel %vm351_vm5, %v135_v51, %v560_v24 }
  0xd0   :  { %v133_v54 = vsel %vm131_vm2, %v558_v47, %v132_v50  ;;  %v350_v56 = vsel %vm348_vm4, %v558_v47, %v132_v50 }
  0xd1   :  { %v137_v61 = vsel %vm130_vm6, %v133_v54, %v136_v55  ;;  %v354_v63 = vsel %vm347_vm8, %v350_v56, %v353_v57 }
  0xd2   :  { %v138_v9 = vsel %vm128_vm14, nan, %v137_v61  ;;  %v355_v12 = vsel %vm128_vm14, nan, %v354_v63 }
  0xd6   :  { %v562_v42 = vpop.eup %561 }
  0xd7   :  { %v564_v58 = vpop.eup %563  ;;  %v238_v59 = vxor.u32 2147483648, %v562_v42 }
  0xd8   :  { %v235_v60 = vxor.u32 2147483648, %v564_v58 }
  0xd9   :  { %v239_v62 = vsel %vm237_vm9, %v238_v59, %v564_v58  ;;  %v457_v2 = vsel %vm455_vm11, %v238_v59, %v564_v58 }
  0xda   :  { %v236_v3 = vsel %vm234_vm7, %v562_v42, %v235_v60  ;;  %v454_v4 = vsel %vm452_vm10, %v562_v42, %v235_v60 }
  0xdb   :  { %v240_v7 = vsel %vm233_vm12, %v236_v3, %v239_v62  ;;  %v458_v8 = vsel %vm451_vm13, %v454_v4, %v457_v2 }
  0xdc   :  { %v241_v11 = vsel %vm231_vm15, nan, %v240_v7  ;;  %v459_v13 = vsel %vm231_vm15, nan, %v458_v8 }
  0xdd   :  { %v530_v14 = vpack.c.bf16 %v241_v11, %v138_v9  ;;  %v535_v15 = vpack.c.bf16 %v459_v13, %v355_v12 }
  0xdf   :  { %531 = vst [vmem:[#allocation2] sm:$0xff] %v530_v14   ;;  %536 = vst [vmem:[#allocation4] sm:$0xff] %v535_v15  }
  0xe0   :  { %576 = shalt.err (!%p573_p4)
}
  0xe1   :  { %s618_s21 = smov 64   ;;  %s619_s22 = smov 4  }
  0xe2   :  { %481 = dma.vmem_to_hbm [thread:$0]  %s476_s1, 128, %s734_s2, [#allocation3], %s618_s21, %s618_s21, %s619_s22  }
  0xe3   :  { %s585_s25 = scalar_lea.vmem %s488_s19, 128  ;;  %p590_p6 = scmp.lt.s32.totalorder %s488_s19, %s488_s19 }
  0xe4   :  { %p586_p5 = scmp.ne.s32.totalorder %s488_s19, %s585_s25  ;;  %p591_p7 = scmp.lt.s32.totalorder %s585_s25, %s585_s25 }
  0xe6   :  { %p592_p8 = por %p591_p7, %p590_p6 }
  0xe8   :  { %p593_p9 = pnand %p592_p8, %p586_p5 }
  0xea   :  { %596 = shalt.err (!%p593_p9)
}
  0xeb   :  { %493 = dma.vmem_to_hbm [thread:$0]  %s488_s19, 128, %s735_s3, [#allocation5], %s618_s21, %s618_s21, %s619_s22  }
  0xec   :  { %605 = dma.done.wait [#allocation3], 128  }
  0xed   :  { %606 = vsyncadd [#allocation3], 4294967168 }
  0xee   :  { %607 = dma.done.wait [#allocation5], 128  }
  0xef   :  { %608 = vsyncadd [#allocation5], 4294967168 }
  0xf0   :  { %500 = vsyncpa [#allocation3], 1 }
  0xf1   :  { %501 = vsyncpa [#allocation5], 1 }

</bundles_post_ra>
